<compile_context>
chip_gen: v7x
topology: tpu7x:2x2x1
jax: 0.10.0
libtpu: 0.0.40
codegen_flags: <defaults>
</compile_context>

<pallas_src>
from functools import partial

import jax
import jax.numpy as jnp
from jax.experimental import pallas as pl
from jax.experimental.pallas import tpu as pltpu


def _round_up(x, m):
    return (x + m - 1) // m * m


def _cdiv(a, b):
    return (a + b - 1) // b


def actor_kernel(x_ref, w1_ref, b1_ref, w2_ref, b2_ref, w3_ref, b3_ref, o_ref):
    # Layer 1: Linear + ReLU  (K = logical obs; block equals full array dim)
    h1 = jnp.dot(x_ref[...], w1_ref[...], preferred_element_type=jnp.float32)
    h1 = jnp.maximum(h1 + b1_ref[...], 0.0)
    # Layer 2: Linear + ReLU
    h2 = jnp.dot(h1, w2_ref[...], preferred_element_type=jnp.float32)
    h2 = jnp.maximum(h2 + b2_ref[...], 0.0)
    # Layer 3: Linear + tanh  (N padded to 128 -> lane-dense unmasked store)
    h3 = jnp.dot(h2, w3_ref[...], preferred_element_type=jnp.float32)
    o_ref[...] = jnp.tanh(h3 + b3_ref[...])


def _choose_tile_b(B, tile_b):
    """Pick the batch tile TB (multiple of 8).

    - Tiny batches (<= 256 rows): one tile of round_up(B, 8) rows (single step,
      no wasted padding rows).
    - Larger batches: at least 2 near-balanced tiles (both v7x TensorCores get
      work; the last tile is never mostly zero padding), capped so each tile
      holds at most ~tile_b rows.
    """
    b8 = _round_up(B, 8)
    if b8 <= 256:
        return b8
    n_steps = max(2, _cdiv(b8, tile_b))
    return _round_up(_cdiv(b8, n_steps), 8)


def prepare_params(params):
    """One-time (per weight update) parameter prep: pad layer-3 N to a multiple
    of 128 so the kernel output is lane-dense. Do NOT call this per forward pass.
    Returns (prepared_params, num_actions)."""
    w3, b3 = params["w3"], params["b3"]
    num_actions = w3.shape[1]
    a_p = _round_up(num_actions, 128)
    prepared = {
        "w1": params["w1"].astype(jnp.float32),
        "b1": params["b1"].astype(jnp.float32),
        "w2": params["w2"].astype(jnp.float32),
        "b2": params["b2"].astype(jnp.float32),
        "w3": jnp.zeros((w3.shape[0], a_p), jnp.float32).at[:, :num_actions].set(w3),
        "b3": jnp.zeros((1, a_p), jnp.float32).at[:, :num_actions].set(b3),
    }
    return prepared, num_actions


@partial(jax.jit, static_argnames=("num_actions", "tile_b"))
def actor_forward(state, prepared_params, num_actions, tile_b=1024):
    """state: (B, obs) f32; prepared_params: output of prepare_params()."""
    p = prepared_params
    w1, b1, w2, b2, w3, b3 = p["w1"], p["b1"], p["w2"], p["b2"], p["w3"], p["b3"]

    state = state.astype(jnp.float32)
    B, obs = state.shape
    H1 = w1.shape[1]
    H2 = w2.shape[1]
    a_p = w3.shape[1]                     # padded (lane-dense) action dim
    A = num_actions                       # logical action dim

    # Batch tiling (adaptive; >=2 steps for large batches, 1 step for tiny ones).
    TB = _choose_tile_b(B, tile_b)
    B_p = _round_up(B, TB)

    # Only the batch axis is (possibly) padded; obs stays at its logical width.
    if B_p == B:
        state_p = state
    else:
        state_p = jnp.zeros((B_p, obs), jnp.float32).at[:B, :].set(state)

    grid = (B_p // TB,)

    in_specs = [
        pl.BlockSpec((TB, obs), lambda i: (i, 0)),   # state: tiled over batch, full obs
        pl.BlockSpec((obs, H1), lambda i: (0, 0)),   # w1: VMEM-resident (constant index)
        pl.BlockSpec((1, H1), lambda i: (0, 0)),     # b1
        pl.BlockSpec((H1, H2), lambda i: (0, 0)),    # w2
        pl.BlockSpec((1, H2), lambda i: (0, 0)),     # b2
        pl.BlockSpec((H2, a_p), lambda i: (0, 0)),   # w3 (N pre-padded to 128)
        pl.BlockSpec((1, a_p), lambda i: (0, 0)),    # b3
    ]
    out_specs = pl.BlockSpec((TB, a_p), lambda i: (i, 0))

    # Advisory cost estimate in LOGICAL (unpadded) dims.
    flops = 2 * B * (obs * H1 + H1 * H2 + H2 * A)
    bytes_accessed = 4 * (
        B * obs + obs * H1 + H1 + H1 * H2 + H2 + H2 * A + A + B * A
    )
    cost = pl.CostEstimate(
        flops=flops,
        transcendentals=B * A,
        bytes_accessed=bytes_accessed,
    )

    out_p = pl.pallas_call(
        actor_kernel,
        out_shape=jax.ShapeDtypeStruct((B_p, a_p), jnp.float32),
        grid=grid,
        in_specs=in_specs,
        out_specs=out_specs,
        compiler_params=pltpu.CompilerParams(
            dimension_semantics=("parallel",),  # shard batch tiles over v7x's 2 TCs
        ),
        cost_estimate=cost,
    )(state_p, w1, b1, w2, b2, w3, b3)

    # Slice off the batch / action padding.  (Downstream consumers that accept
    # the padded (B_p, a_p) layout can use out_p directly to skip this copy.)
    return out_p[:B, :A]


def init_actor_params(key, observation_size, num_actions, hidden=(256, 256)):
    """Deterministic init mimicking PyTorch nn.Linear default U(-1/sqrt(fan_in), +1/sqrt(fan_in))."""
    dims = [observation_size, hidden[0], hidden[1], num_actions]
    params = {}
    keys = jax.random.split(key, 6)
    for i in range(3):
        fan_in, fan_out = dims[i], dims[i + 1]
        bound = 1.0 / jnp.sqrt(jnp.float32(fan_in))
        w = jax.random.uniform(keys[2 * i], (fan_in, fan_out), jnp.float32, -bound, bound)
        b = jax.random.uniform(keys[2 * i + 1], (1, fan_out), jnp.float32, -bound, bound)
        params[f"w{i+1}"] = w
        params[f"b{i+1}"] = b
    return params


def actor_reference(state, params):
    """Plain JAX reference for correctness check."""
    h = jnp.maximum(state @ params["w1"] + params["b1"], 0.0)
    h = jnp.maximum(h @ params["w2"] + params["b2"], 0.0)
    return jnp.tanh(h @ params["w3"] + params["b3"])


if __name__ == "__main__":
    observation_size = 16
    num_actions = 8
    batch = 8

    key = jax.random.PRNGKey(0)
    pkey, xkey = jax.random.split(key)
    params = init_actor_params(pkey, observation_size, num_actions)
    prepared, A = prepare_params(params)   # one-time weight prep (not per call)
    state = jax.random.normal(xkey, (batch, observation_size), jnp.float32)

    out = jax.block_until_ready(actor_forward(state, prepared, A))
    ref = actor_reference(state, params)
    assert out.shape == (batch, num_actions)
    assert jnp.allclose(out, ref, atol=1e-5, rtol=1e-5), "mismatch vs reference"

    # Larger batch: exercises the adaptive >=2-step tiling (777 -> 2 tiles of 392)
    # with a non-multiple-of-TB batch.
    big_state = jax.random.normal(jax.random.PRNGKey(1), (777, observation_size), jnp.float32)
    big_out = jax.block_until_ready(actor_forward(big_state, prepared, A))
    big_ref = actor_reference(big_state, params)
    assert big_out.shape == (777, num_actions)
    assert jnp.allclose(big_out, big_ref, atol=1e-5, rtol=1e-5), "mismatch vs reference (big batch)"

    print("KERNEL_OK")
</pallas_src>

<mosaic_0001>
module attributes {stable_mosaic.version = 11 : i64} {
  func.func @actor_kernel(%arg0: i32, %arg1: memref<8x16xf32, #tpu.memory_space<vmem>>, %arg2: memref<16x256xf32, #tpu.memory_space<vmem>>, %arg3: memref<1x256xf32, #tpu.memory_space<vmem>>, %arg4: memref<256x256xf32, #tpu.memory_space<vmem>>, %arg5: memref<1x256xf32, #tpu.memory_space<vmem>>, %arg6: memref<256x128xf32, #tpu.memory_space<vmem>>, %arg7: memref<1x128xf32, #tpu.memory_space<vmem>>, %arg8: memref<8x128xf32, #tpu.memory_space<vmem>>) attributes {dimension_semantics = [#tpu.dimension_semantics<parallel>], iteration_bounds = array<i64: 1>, scalar_prefetch = 0 : i64, scratch_operands = 0 : i64, tpu.core_type = #tpu.core_type<tc>, window_params = [{transform_indices = @transform_0, window_bounds = array<i64: 8, 16>}, {pipeline_mode = #tpu.pipeline_mode<synchronous>, transform_indices = @transform_1, window_bounds = array<i64: 16, 256>}, {pipeline_mode = #tpu.pipeline_mode<synchronous>, transform_indices = @transform_2, window_bounds = array<i64: 1, 256>}, {pipeline_mode = #tpu.pipeline_mode<synchronous>, transform_indices = @transform_3, window_bounds = array<i64: 256, 256>}, {pipeline_mode = #tpu.pipeline_mode<synchronous>, transform_indices = @transform_4, window_bounds = array<i64: 1, 256>}, {pipeline_mode = #tpu.pipeline_mode<synchronous>, transform_indices = @transform_5, window_bounds = array<i64: 256, 128>}, {pipeline_mode = #tpu.pipeline_mode<synchronous>, transform_indices = @transform_6, window_bounds = array<i64: 1, 128>}, {transform_indices = @transform_7, window_bounds = array<i64: 8, 128>}]} {
    %c0 = arith.constant 0 : index
    %c0_0 = arith.constant 0 : index
    %0 = vector.load %arg1[%c0, %c0_0] : memref<8x16xf32, #tpu.memory_space<vmem>>, vector<8x16xf32>
    %c0_1 = arith.constant 0 : index
    %c0_2 = arith.constant 0 : index
    %1 = vector.load %arg2[%c0_1, %c0_2] : memref<16x256xf32, #tpu.memory_space<vmem>>, vector<16x256xf32>
    %cst = arith.constant dense<0.000000e+00> : vector<8x256xf32>
    %2 = tpu.matmul %0, %1, %cst {dimension_numbers = #tpu.dot_dimension_numbers<[1], [0], [0], [1], [0, 0, 1, 1], [], []>} : vector<8x16xf32>, vector<16x256xf32>, vector<8x256xf32> -> vector<8x256xf32>
    %c0_3 = arith.constant 0 : index
    %c0_4 = arith.constant 0 : index
    %3 = vector.load %arg3[%c0_3, %c0_4] : memref<1x256xf32, #tpu.memory_space<vmem>>, vector<1x256xf32>
    %4 = vector.broadcast %3 : vector<1x256xf32> to vector<8x256xf32>
    %5 = arith.addf %2, %4 : vector<8x256xf32>
    %cst_5 = arith.constant 0.000000e+00 : f32
    %6 = vector.broadcast %cst_5 : f32 to vector<8x256xf32>
    %7 = arith.maximumf %5, %6 : vector<8x256xf32>
    %c0_6 = arith.constant 0 : index
    %c0_7 = arith.constant 0 : index
    %8 = vector.load %arg4[%c0_6, %c0_7] : memref<256x256xf32, #tpu.memory_space<vmem>>, vector<256x256xf32>
    %cst_8 = arith.constant dense<0.000000e+00> : vector<8x256xf32>
    %9 = tpu.matmul %7, %8, %cst_8 {dimension_numbers = #tpu.dot_dimension_numbers<[1], [0], [0], [1], [0, 0, 1, 1], [], []>} : vector<8x256xf32>, vector<256x256xf32>, vector<8x256xf32> -> vector<8x256xf32>
    %c0_9 = arith.constant 0 : index
    %c0_10 = arith.constant 0 : index
    %10 = vector.load %arg5[%c0_9, %c0_10] : memref<1x256xf32, #tpu.memory_space<vmem>>, vector<1x256xf32>
    %11 = vector.broadcast %10 : vector<1x256xf32> to vector<8x256xf32>
    %12 = arith.addf %9, %11 : vector<8x256xf32>
    %cst_11 = arith.constant 0.000000e+00 : f32
    %13 = vector.broadcast %cst_11 : f32 to vector<8x256xf32>
    %14 = arith.maximumf %12, %13 : vector<8x256xf32>
    %c0_12 = arith.constant 0 : index
    %c0_13 = arith.constant 0 : index
    %15 = vector.load %arg6[%c0_12, %c0_13] : memref<256x128xf32, #tpu.memory_space<vmem>>, vector<256x128xf32>
    %cst_14 = arith.constant dense<0.000000e+00> : vector<8x128xf32>
    %16 = tpu.matmul %14, %15, %cst_14 {dimension_numbers = #tpu.dot_dimension_numbers<[1], [0], [0], [1], [0, 0, 1, 1], [], []>} : vector<8x256xf32>, vector<256x128xf32>, vector<8x128xf32> -> vector<8x128xf32>
    %c0_15 = arith.constant 0 : index
    %c0_16 = arith.constant 0 : index
    %17 = vector.load %arg7[%c0_15, %c0_16] : memref<1x128xf32, #tpu.memory_space<vmem>>, vector<1x128xf32>
    %18 = vector.broadcast %17 : vector<1x128xf32> to vector<8x128xf32>
    %19 = arith.addf %16, %18 : vector<8x128xf32>
    %20 = math.tanh %19 : vector<8x128xf32>
    %c0_17 = arith.constant 0 : index
    %c0_18 = arith.constant 0 : index
    %21 = vector.load %arg8[%c0_17, %c0_18] : memref<8x128xf32, #tpu.memory_space<vmem>>, vector<8x128xf32>
    tpu.vector_store %arg8[%c0_17, %c0_18], %20 {strides = array<i32>} : memref<8x128xf32, #tpu.memory_space<vmem>>, vector<8x128xf32>,
    return
  }
  func.func @transform_0(%arg0: i32) -> (i32, i32) {
    %c0_i32 = arith.constant 0 : i32
    %c0_i32_0 = arith.constant 0 : i32
    return %arg0, %c0_i32 : i32, i32
  }
  func.func @transform_1(%arg0: i32) -> (i32, i32) {
    %c0_i32 = arith.constant 0 : i32
    %c0_i32_0 = arith.constant 0 : i32
    %c0_i32_1 = arith.constant 0 : i32
    return %c0_i32, %c0_i32_0 : i32, i32
  }
  func.func @transform_2(%arg0: i32) -> (i32, i32) {
    %c0_i32 = arith.constant 0 : i32
    %c0_i32_0 = arith.constant 0 : i32
    %c0_i32_1 = arith.constant 0 : i32
    return %c0_i32, %c0_i32_0 : i32, i32
  }
  func.func @transform_3(%arg0: i32) -> (i32, i32) {
    %c0_i32 = arith.constant 0 : i32
    %c0_i32_0 = arith.constant 0 : i32
    %c0_i32_1 = arith.constant 0 : i32
    return %c0_i32, %c0_i32_0 : i32, i32
  }
  func.func @transform_4(%arg0: i32) -> (i32, i32) {
    %c0_i32 = arith.constant 0 : i32
    %c0_i32_0 = arith.constant 0 : i32
    %c0_i32_1 = arith.constant 0 : i32
    return %c0_i32, %c0_i32_0 : i32, i32
  }
  func.func @transform_5(%arg0: i32) -> (i32, i32) {
    %c0_i32 = arith.constant 0 : i32
    %c0_i32_0 = arith.constant 0 : i32
    %c0_i32_1 = arith.constant 0 : i32
    return %c0_i32, %c0_i32_0 : i32, i32
  }
  func.func @transform_6(%arg0: i32) -> (i32, i32) {
    %c0_i32 = arith.constant 0 : i32
    %c0_i32_0 = arith.constant 0 : i32
    %c0_i32_1 = arith.constant 0 : i32
    return %c0_i32, %c0_i32_0 : i32, i32
  }
  func.func @transform_7(%arg0: i32) -> (i32, i32) {
    %c0_i32 = arith.constant 0 : i32
    %c0_i32_0 = arith.constant 0 : i32
    return %arg0, %c0_i32 : i32, i32
  }
}

</mosaic_0001>

<bundles_post_ra>
// kernel: actor_forward.1
= control target key start
LH: loop header
LB: loop body
LE: loop exit
PB: predicated region body
PF: predicated region fallthrough
CT: control target
= control target key end

     0   :  { %12 = vsyncpa [#allocation3], 0  ;;  %s843_s0 = inlined_call_operand.hbm [shape: f32[8,16], index: 0, kind: input, shape index: {}]   ;;  %s844_s1 = inlined_call_operand.hbm [shape: f32[16,256], index: 1, kind: input, shape index: {}]   ;;  %s845_s2 = inlined_call_operand.vmem [shape: f32[1,256], index: 2, kind: input, shape index: {}]   ;;  %s846_s3 = inlined_call_operand.hbm [shape: f32[256,256], index: 3, kind: input, shape index: {}]   ;;  %s847_s4 = inlined_call_operand.vmem [shape: f32[1,256], index: 4, kind: input, shape index: {}]   ;;  %s848_s5 = inlined_call_operand.hbm [shape: f32[256,128], index: 5, kind: input, shape index: {}]   ;;  %s849_s6 = inlined_call_operand.vmem [shape: f32[1,128], index: 6, kind: input, shape index: {}]   ;;  %s850_s7 = inlined_call_operand.hbm [shape: f32[8,128], index: 7, kind: output, shape index: {}]  }
   0x1   :  { %13 = vsyncpa [#allocation6], 0 }
   0x2   :  { %14 = vsyncpa [#allocation9], 0 }
   0x3   :  { %15 = vsyncpa [#allocation4], 0  ;;  %s718_s24 = smov [#allocation5]   ;;  %s600_s28 = scalar_lea.hbm %s844_s1, 512 }
   0x4   :  { %s31_s25 = sshll.u32 %s718_s24, 4  ;;  %p601_p0 = scmp.ne.s32.totalorder %s844_s1, %s600_s28  ;;  %s32_s25 = int_to_ptr.vmem [resolvable:$true] %s31_s25 }
   0x5   :  { %p604_p1 = scmp.lt.u32.totalorder %s600_s28, %s844_s1 }
   0x7   :  { %p606_p2 = pnand %p604_p1, %p601_p0 }
   0x9   :  { %609 = shalt.err (!%p606_p2)
}
   0xa   :  { %s610_s10 = scalar_lea.vmem %s32_s25, 512  ;;  %p615_p4 = scmp.lt.s32.totalorder %s32_s25, %s32_s25 }
   0xb   :  { %p611_p3 = scmp.ne.s32.totalorder %s32_s25, %s610_s10  ;;  %p616_p5 = scmp.lt.s32.totalorder %s610_s10, %s610_s10 }
   0xd   :  { %p617_p6 = por %p616_p5, %p615_p4 }
   0xf   :  { %p618_p7 = pnand %p617_p6, %p611_p3 }
  0x11   :  { %621 = shalt.err (!%p618_p7)
}
  0x12   :  { %s719_s11 = smov 256   ;;  %s720_s12 = smov 16  }
  0x13   :  { %37 = dma.hbm_to_vmem [thread:$0]  %s844_s1, 512, %s32_s25, [#allocation6], %s719_s11, %s719_s11, %s720_s12  }
  0x14   :  { %s721_s15 = smov [#allocation2]   ;;  %s722_s17 = smov [#allocation7]  }
  0x15   :  { %s22_s16 = sshll.u32 %s721_s15, 4  ;;  %s45_s18 = sshll.u32 %s722_s17, 4  ;;  %s23_s16 = int_to_ptr.vmem [resolvable:$true] %s22_s16  ;;  %s46_s18 = int_to_ptr.vmem [resolvable:$true] %s45_s18 }
  0x16   :  { %s622_s21 = scalar_lea.hbm %s843_s0, 128 }
  0x17   :  { %p623_p8 = scmp.ne.s32.totalorder %s843_s0, %s622_s21  ;;  %p626_p9 = scmp.lt.u32.totalorder %s622_s21, %s843_s0 }
  0x19   :  { %p628_p10 = pnand %p626_p9, %p623_p8 }
  0x1b   :  { %631 = shalt.err (!%p628_p10)
}
  0x1c   :  { %s632_s1 = scalar_lea.vmem %s23_s16, 128  ;;  %p637_p12 = scmp.lt.s32.totalorder %s23_s16, %s23_s16 }
  0x1d   :  { %p633_p11 = scmp.ne.s32.totalorder %s23_s16, %s632_s1  ;;  %p638_p13 = scmp.lt.s32.totalorder %s632_s1, %s632_s1 }
  0x1f   :  { %p639_p0 = por %p638_p13, %p637_p12 }
  0x21   :  { %p640_p1 = pnand %p639_p0, %p633_p11 }
  0x23   :  { %643 = shalt.err (!%p640_p1)
}
  0x24   :  { %25 = dma.hbm_to_vmem [thread:$0]  %s843_s0, 128, %s23_s16, [#allocation3]  }
  0x25   :  { %s644_s30 = scalar_lea.hbm %s846_s3, 8192 }
  0x26   :  { %p645_p2 = scmp.ne.s32.totalorder %s846_s3, %s644_s30  ;;  %p648_p3 = scmp.lt.u32.totalorder %s644_s30, %s846_s3 }
  0x28   :  { %p650_p4 = pnand %p648_p3, %p645_p2 }
  0x2a   :  { %653 = shalt.err (!%p650_p4)
}
  0x2b   :  { %s654_s14 = scalar_lea.vmem %s46_s18, 8192  ;;  %p659_p6 = scmp.lt.s32.totalorder %s46_s18, %s46_s18 }
  0x2c   :  { %p655_p5 = scmp.ne.s32.totalorder %s46_s18, %s654_s14  ;;  %p660_p7 = scmp.lt.s32.totalorder %s654_s14, %s654_s14 }
  0x2e   :  { %p661_p8 = por %p660_p7, %p659_p6 }
  0x30   :  { %p662_p9 = pnand %p661_p8, %p655_p5 }
  0x32   :  { %665 = shalt.err (!%p662_p9)
}
  0x33   :  { %51 = dma.hbm_to_vmem [thread:$0]  %s846_s3, 8192, %s46_s18, [#allocation6], %s719_s11, %s719_s11, %s720_s12  }
  0x34   :  { %s723_s16 = smov [#allocation8]   ;;  %s666_s21 = scalar_lea.hbm %s848_s5, 4096 }
  0x35   :  { %s59_s17 = sshll.u32 %s723_s16, 4  ;;  %p667_p10 = scmp.ne.s32.totalorder %s848_s5, %s666_s21  ;;  %s60_s17 = int_to_ptr.vmem [resolvable:$true] %s59_s17 }
  0x36   :  { %p670_p11 = scmp.lt.u32.totalorder %s666_s21, %s848_s5 }
  0x38   :  { %p672_p12 = pnand %p670_p11, %p667_p10 }
  0x3a   :  { %675 = shalt.err (!%p672_p12)
}
  0x3b   :  { %s676_s1 = scalar_lea.vmem %s60_s17, 4096  ;;  %p681_p0 = scmp.lt.s32.totalorder %s60_s17, %s60_s17 }
  0x3c   :  { %p677_p13 = scmp.ne.s32.totalorder %s60_s17, %s676_s1  ;;  %p682_p1 = scmp.lt.s32.totalorder %s676_s1, %s676_s1 }
  0x3e   :  { %p683_p2 = por %p682_p1, %p681_p0 }
  0x40   :  { %p684_p3 = pnand %p683_p2, %p677_p13 }
  0x42   :  { %687 = shalt.err (!%p684_p3)
}
  0x43   :  { %s724_s3 = smov 128   ;;  %s725_s11 = smov 8  }
  0x44   :  { %65 = dma.hbm_to_vmem [thread:$0]  %s848_s5, 4096, %s60_s17, [#allocation9], %s724_s3, %s724_s3, %s725_s11  }
  0x45   :  { %710 = dma.done.wait [#allocation3], 128  }
  0x46   :  { %711 = vsyncadd [#allocation3], 4294967168 }
  0x47   :  { %712 = dma.done.wait [#allocation6], 8704  }
  0x48   :  { %713 = vsyncadd [#allocation6], 4294958592 }
  0x49   :  { %714 = dma.done.wait [#allocation9], 4096  }
  0x4a   :  { %715 = vsyncadd [#allocation9], 4294963200  ;;  %v726_v0 = vmov 0.0   ;;  %v82_v1 = vld [vmem:[#allocation5 + $0x8] sm:$0xff]  ;;  %v84_v2 = vld [vmem:[#allocation5 + $0x18] sm:$0xff]  ;;  %vm97_vm0 = vcmask 130048  }
  0x4b   :  { %165 = vmatprep.mubr.f32.mxu0 %v726_v0  ;;  %v81_v3 = vld [vmem:[#allocation5] sm:$0xff]  ;;  %v488_v4 = vpack.c.bf16 %v84_v2, %v82_v1  ;;  %v83_v5 = vld [vmem:[#allocation5 + $0x10] sm:$0xff]  ;;  %v175_v6 = vld [vmem:[#allocation7 + $0x8] sm:$0xff] }
  0x4c   :  { %v490_v7 = vpack.c.bf16 %v83_v5, %v81_v3  ;;  %v80_v8 = vld [vmem:[#allocation2] sm:$0xff]  ;;  %v174_v10 = vld [vmem:[#allocation7] sm:$0xff]  ;;  %v176_v11 = vld [vmem:[#allocation7 + $0x10] sm:$0xff] }
  0x4d   :  { %v177_v9 = vld [vmem:[#allocation7 + $0x18] sm:$0xff]  ;;  %489 = vmatprep.subr.bf16.mxu0 %v488_v4  ;;  %v494_v13 = vpack.c.bf16 %v176_v11, %v174_v10  ;;  %v179_v14 = vld [vmem:[#allocation7 + $0x28] sm:$0xff]  ;;  %v178_v16 = vld [vmem:[#allocation7 + $0x20] sm:$0xff] }
  0x4e   :  { %v492_v12 = vpack.c.bf16 %v177_v9, %v175_v6  ;;  %v181_v15 = vld [vmem:[#allocation7 + $0x38] sm:$0xff]  ;;  %491 = vmatpush1.bf16.msra.mxu0 %v490_v7  ;;  %v180_v18 = vld [vmem:[#allocation7 + $0x30] sm:$0xff]  ;;  %v183_v19 = vld [vmem:[#allocation7 + $0x48] sm:$0xff] }
  0x4f   :  { %v496_v17 = vpack.c.bf16 %v181_v15, %v179_v14  ;;  %v185_v20 = vld [vmem:[#allocation7 + $0x58] sm:$0xff]  ;;  %v498_v21 = vpack.c.bf16 %v180_v18, %v178_v16  ;;  %v182_v23 = vld [vmem:[#allocation7 + $0x40] sm:$0xff]  ;;  %v184_v24 = vld [vmem:[#allocation7 + $0x50] sm:$0xff] }
  0x50   :  { %493 = vmatprep.subr.bf16.mxu1 %v492_v12  ;;  %v500_v22 = vpack.c.bf16 %v185_v20, %v183_v19  ;;  %v187_v25 = vld [vmem:[#allocation7 + $0x68] sm:$0xff]  ;;  %v189_v26 = vld [vmem:[#allocation7 + $0x78] sm:$0xff]  ;;  %v502_v27 = vpack.c.bf16 %v184_v24, %v182_v23  ;;  %v186_v29 = vld [vmem:[#allocation7 + $0x60] sm:$0xff] }
  0x51   :  { %495 = vmatpush1.bf16.msra.mxu1 %v494_v13  ;;  %451 = vmatmul.mubr.msk.f32.vlgmr.msra.gmra.mrb[0].mxu0 %vm97_vm0, %v80_v8  ;;  %v504_v28 = vpack.c.bf16 %v189_v26, %v187_v25  ;;  %v188_v30 = vld [vmem:[#allocation7 + $0x70] sm:$0xff]  ;;  %v191_v31 = vld [vmem:[#allocation7 + $0x88] sm:$0xff]  ;;  %v193_v32 = vld [vmem:[#allocation7 + $0x98] sm:$0xff] }
  0x52   :  { %497 = vmatprep.subr.bf16.mxu1 %v496_v17  ;;  %v506_v33 = vpack.c.bf16 %v188_v30, %v186_v29  ;;  %v508_v34 = vpack.c.bf16 %v193_v32, %v191_v31  ;;  %v190_v35 = vld [vmem:[#allocation7 + $0x80] sm:$0xff]  ;;  %v192_v36 = vld [vmem:[#allocation7 + $0x90] sm:$0xff]  ;;  %v195_v37 = vld [vmem:[#allocation7 + $0xa8] sm:$0xff] }
  0x53   :  { %v197_v38 = vld [vmem:[#allocation7 + $0xb8] sm:$0xff]  ;;  %v510_v39 = vpack.c.bf16 %v192_v36, %v190_v35  ;;  %v194_v41 = vld [vmem:[#allocation7 + $0xa0] sm:$0xff]  ;;  %v196_v42 = vld [vmem:[#allocation7 + $0xb0] sm:$0xff] }
  0x54   :  { %v512_v40 = vpack.c.bf16 %v197_v38, %v195_v37  ;;  %v199_v43 = vld [vmem:[#allocation7 + $0xc8] sm:$0xff]  ;;  %v201_v44 = vld [vmem:[#allocation7 + $0xd8] sm:$0xff]  ;;  %v514_v45 = vpack.c.bf16 %v196_v42, %v194_v41  ;;  %v198_v47 = vld [vmem:[#allocation7 + $0xc0] sm:$0xff] }
  0x55   :  { %499 = vmatpush1.bf16.msra.mxu1 %v498_v21  ;;  %v516_v46 = vpack.c.bf16 %v201_v44, %v199_v43  ;;  %v200_v48 = vld [vmem:[#allocation7 + $0xd0] sm:$0xff]  ;;  %v203_v49 = vld [vmem:[#allocation7 + $0xe8] sm:$0xff]  ;;  %v205_v50 = vld [vmem:[#allocation7 + $0xf8] sm:$0xff] }
  0x56   :  { %501 = vmatprep.subr.bf16.mxu1 %v500_v22  ;;  %v518_v51 = vpack.c.bf16 %v200_v48, %v198_v47  ;;  %v520_v52 = vpack.c.bf16 %v205_v50, %v203_v49  ;;  %v202_v53 = vld [vmem:[#allocation7 + $0xe0] sm:$0xff]  ;;  %v204_v54 = vld [vmem:[#allocation7 + $0xf0] sm:$0xff]  ;;  %v207_v55 = vld [vmem:[#allocation7 + $0x108] sm:$0xff] }
  0x57   :  { %v209_v56 = vld [vmem:[#allocation7 + $0x118] sm:$0xff]  ;;  %v522_v57 = vpack.c.bf16 %v204_v54, %v202_v53  ;;  %v206_v59 = vld [vmem:[#allocation7 + $0x100] sm:$0xff]  ;;  %v208_v60 = vld [vmem:[#allocation7 + $0x110] sm:$0xff] }
  0x58   :  { %v524_v58 = vpack.c.bf16 %v209_v56, %v207_v55  ;;  %v211_v61 = vld [vmem:[#allocation7 + $0x128] sm:$0xff]  ;;  %v213_v62 = vld [vmem:[#allocation7 + $0x138] sm:$0xff]  ;;  %v526_v63 = vpack.c.bf16 %v208_v60, %v206_v59  ;;  %v210_v1 = vld [vmem:[#allocation7 + $0x120] sm:$0xff] }
  0x59   :  { %503 = vmatpush1.bf16.msra.mxu1 %v502_v27  ;;  %v528_v0 = vpack.c.bf16 %v213_v62, %v211_v61  ;;  %v212_v2 = vld [vmem:[#allocation7 + $0x130] sm:$0xff]  ;;  %v215_v3 = vld [vmem:[#allocation7 + $0x148] sm:$0xff]  ;;  %v217_v4 = vld [vmem:[#allocation7 + $0x158] sm:$0xff] }
  0x5a   :  { %505 = vmatprep.subr.bf16.mxu1 %v504_v28  ;;  %v530_v5 = vpack.c.bf16 %v212_v2, %v210_v1  ;;  %v532_v6 = vpack.c.bf16 %v217_v4, %v215_v3  ;;  %v214_v7 = vld [vmem:[#allocation7 + $0x140] sm:$0xff]  ;;  %v216_v8 = vld [vmem:[#allocation7 + $0x150] sm:$0xff]  ;;  %v219_v9 = vld [vmem:[#allocation7 + $0x168] sm:$0xff] }
  0x5b   :  { %v221_v10 = vld [vmem:[#allocation7 + $0x178] sm:$0xff]  ;;  %v534_v11 = vpack.c.bf16 %v216_v8, %v214_v7  ;;  %v218_v13 = vld [vmem:[#allocation7 + $0x160] sm:$0xff]  ;;  %v220_v14 = vld [vmem:[#allocation7 + $0x170] sm:$0xff] }
  0x5c   :  { %v536_v12 = vpack.c.bf16 %v221_v10, %v219_v9  ;;  %v223_v15 = vld [vmem:[#allocation7 + $0x188] sm:$0xff]  ;;  %v225_v16 = vld [vmem:[#allocation7 + $0x198] sm:$0xff]  ;;  %v538_v17 = vpack.c.bf16 %v220_v14, %v218_v13  ;;  %v222_v19 = vld [vmem:[#allocation7 + $0x180] sm:$0xff] }
  0x5d   :  { %507 = vmatpush1.bf16.msra.mxu1 %v506_v33  ;;  %v540_v18 = vpack.c.bf16 %v225_v16, %v223_v15  ;;  %v224_v20 = vld [vmem:[#allocation7 + $0x190] sm:$0xff]  ;;  %v227_v21 = vld [vmem:[#allocation7 + $0x1a8] sm:$0xff]  ;;  %v229_v22 = vld [vmem:[#allocation7 + $0x1b8] sm:$0xff]  ;;  %v87_v15 = vlaneseq }
  0x5e   :  { %509 = vmatprep.subr.bf16.mxu1 %v508_v34  ;;  %v542_v23 = vpack.c.bf16 %v224_v20, %v222_v19  ;;  %v544_v24 = vpack.c.bf16 %v229_v22, %v227_v21  ;;  %v226_v25 = vld [vmem:[#allocation7 + $0x1a0] sm:$0xff]  ;;  %v228_v26 = vld [vmem:[#allocation7 + $0x1b0] sm:$0xff]  ;;  %v231_v27 = vld [vmem:[#allocation7 + $0x1c8] sm:$0xff] }
  0x5f   :  { %v233_v28 = vld [vmem:[#allocation7 + $0x1d8] sm:$0xff]  ;;  %v546_v29 = vpack.c.bf16 %v228_v26, %v226_v25  ;;  %v230_v31 = vld [vmem:[#allocation7 + $0x1c0] sm:$0xff]  ;;  %v232_v32 = vld [vmem:[#allocation7 + $0x1d0] sm:$0xff]  ;;  %v88_v16 = vshrl.u32 %v87_v15, 7 }
  0x60   :  { %v548_v30 = vpack.c.bf16 %v233_v28, %v231_v27  ;;  %v550_v33 = vpack.c.bf16 %v232_v32, %v230_v31  ;;  %v235_v34 = vld [vmem:[#allocation7 + $0x1e8] sm:$0xff]  ;;  %v237_v35 = vld [vmem:[#allocation7 + $0x1f8] sm:$0xff]  ;;  %v234_v37 = vld [vmem:[#allocation7 + $0x1e0] sm:$0xff] }
  0x61   :  { %511 = vmatpush1.bf16.msra.mxu1 %v510_v39  ;;  %v552_v36 = vpack.c.bf16 %v237_v35, %v235_v34  ;;  %v236_v38 = vld [vmem:[#allocation7 + $0x1f0] sm:$0xff]  ;;  %v340_v41 = vld [vmem:[#allocation8 + $0x88] sm:$0xff]  ;;  %v323_v42 = vld [vmem:[#allocation8] sm:$0xff]  ;;  %v93_v19 = vsub.s32 1, %v88_v16 }
  0x62   :  { %513 = vmatprep.subr.bf16.mxu1 %v512_v40  ;;  %v554_v39 = vpack.c.bf16 %v236_v38, %v234_v37  ;;  %v339_v40 = vld [vmem:[#allocation8 + $0x80] sm:$0xff]  ;;  %v324_v44 = vld [vmem:[#allocation8 + $0x8] sm:$0xff]  ;;  %v325_v49 = vld [vmem:[#allocation8 + $0x10] sm:$0xff] }
  0x63   :  { %v556_v43 = vpack.c.bf16 %v340_v41, %v339_v40  ;;  %v558_v47 = vpack.c.bf16 %v324_v44, %v323_v42  ;;  %v326_v50 = vld [vmem:[#allocation8 + $0x18] sm:$0xff]  ;;  %v327_v55 = vld [vmem:[#allocation8 + $0x20] sm:$0xff]  ;;  %v328_v56 = vld [vmem:[#allocation8 + $0x28] sm:$0xff] }
  0x64   :  { %v562_v53 = vpack.c.bf16 %v326_v50, %v325_v49  ;;  %v566_v59 = vpack.c.bf16 %v328_v56, %v327_v55  ;;  %v329_v61 = vld [vmem:[#allocation8 + $0x30] sm:$0xff]  ;;  %v330_v62 = vld [vmem:[#allocation8 + $0x38] sm:$0xff]  ;;  %v331_v3 = vld [vmem:[#allocation8 + $0x40] sm:$0xff] }
  0x65   :  { %515 = vmatpush1.bf16.msra.mxu1 %v514_v45  ;;  %v341_v45 = vld [vmem:[#allocation8 + $0x90] sm:$0xff]  ;;  %557 = vmatprep.subr.bf16.mxu0 %v556_v43  ;;  %v570_v1 = vpack.c.bf16 %v330_v62, %v329_v61  ;;  %v332_v4 = vld [vmem:[#allocation8 + $0x48] sm:$0xff]  ;;  %v334_v10 = vld [vmem:[#allocation8 + $0x58] sm:$0xff] }
  0x66   :  { %517 = vmatprep.subr.bf16.mxu1 %v516_v46  ;;  %v342_v46 = vld [vmem:[#allocation8 + $0x98] sm:$0xff]  ;;  %559 = vmatpush3.bf16.msra.mxu0 %v558_v47  ;;  %v574_v7 = vpack.c.bf16 %v332_v4, %v331_v3  ;;  %v333_v9 = vld [vmem:[#allocation8 + $0x50] sm:$0xff]  ;;  %v335_v28 = vld [vmem:[#allocation8 + $0x60] sm:$0xff] }
  0x67   :  { %v560_v48 = vpack.c.bf16 %v342_v46, %v341_v45  ;;  %v578_v13 = vpack.c.bf16 %v334_v10, %v333_v9  ;;  %v353_v31 = vld [vmem:[#allocation8 + $0xf0] sm:$0xff]  ;;  %v354_v32 = vld [vmem:[#allocation8 + $0xf8] sm:$0xff] }
  0x68   :  { %v337_v34 = vld [vmem:[#allocation8 + $0x70] sm:$0xff]  ;;  %v338_v35 = vld [vmem:[#allocation8 + $0x78] sm:$0xff] }
  0x69   :  { %519 = vmatpush1.bf16.msra.mxu1 %v518_v51  ;;  %v343_v51 = vld [vmem:[#allocation8 + $0xa0] sm:$0xff]  ;;  %561 = vmatprep.subr.bf16.mxu0 %v560_v48  ;;  %v238_v37 = vld [vmem:[%s847_s4] sm:$0x3]  ;;  %s727_s4 = smov [#allocation10]  }
  0x6a   :  { %521 = vmatprep.subr.bf16.mxu1 %v520_v52  ;;  %v344_v52 = vld [vmem:[#allocation8 + $0xa8] sm:$0xff]  ;;  %563 = vmatpush3.bf16.msra.mxu0 %v562_v53  ;;  %v452_v47 = vld [vmem:[%s849_s6] ss:$0 sm:$0xff]  ;;  %s440_s30 = sshll.u32 %s727_s4, 4  ;;  %s441_s30 = int_to_ptr.vmem [resolvable:$true] %s440_s30 }
  0x6b   :  { %v564_v54 = vpack.c.bf16 %v344_v52, %v343_v51  ;;  %s688_s8 = scalar_lea.vmem %s441_s30, 128  ;;  %p693_p5 = scmp.lt.s32.totalorder %s441_s30, %s441_s30 }
  0x6c   :  { %p689_p4 = scmp.ne.s32.totalorder %s441_s30, %s688_s8  ;;  %p694_p6 = scmp.lt.s32.totalorder %s688_s8, %s688_s8 }
  0x6d   :  { %523 = vmatpush1.bf16.msra.mxu1 %v522_v57  ;;  %v345_v57 = vld [vmem:[#allocation8 + $0xb0] sm:$0xff]  ;;  %565 = vmatprep.subr.bf16.mxu0 %v564_v54 }
  0x6e   :  { %525 = vmatprep.subr.bf16.mxu1 %v524_v58  ;;  %v346_v58 = vld [vmem:[#allocation8 + $0xb8] sm:$0xff]  ;;  %567 = vmatpush3.bf16.msra.mxu0 %v566_v59  ;;  %p695_p7 = por %p694_p6, %p693_p5 }
  0x6f   :  { %v568_v60 = vpack.c.bf16 %v346_v58, %v345_v57 }
  0x70   :  { %p696_p8 = pnand %p695_p7, %p689_p4 }
  0x71   :  { %527 = vmatpush1.bf16.msra.mxu1 %v526_v63  ;;  %v347_v63 = vld [vmem:[#allocation8 + $0xc0] sm:$0xff]  ;;  %569 = vmatprep.subr.bf16.mxu0 %v568_v60 }
  0x72   :  { %529 = vmatprep.subr.bf16.mxu1 %v528_v0  ;;  %v348_v0 = vld [vmem:[#allocation8 + $0xc8] sm:$0xff]  ;;  %571 = vmatpush3.bf16.msra.mxu0 %v570_v1 }
  0x73   :  { %v572_v2 = vpack.c.bf16 %v348_v0, %v347_v63 }
  0x75   :  { %531 = vmatpush1.bf16.msra.mxu1 %v530_v5  ;;  %v349_v5 = vld [vmem:[#allocation8 + $0xd0] sm:$0xff]  ;;  %573 = vmatprep.subr.bf16.mxu0 %v572_v2 }
  0x76   :  { %533 = vmatprep.subr.bf16.mxu1 %v532_v6  ;;  %v350_v6 = vld [vmem:[#allocation8 + $0xd8] sm:$0xff]  ;;  %575 = vmatpush3.bf16.msra.mxu0 %v574_v7 }
  0x77   :  { %v576_v8 = vpack.c.bf16 %v350_v6, %v349_v5 }
  0x79   :  { %535 = vmatpush1.bf16.msra.mxu1 %v534_v11  ;;  %v351_v11 = vld [vmem:[#allocation8 + $0xe0] sm:$0xff]  ;;  %577 = vmatprep.subr.bf16.mxu0 %v576_v8 }
  0x7a   :  { %537 = vmatprep.subr.bf16.mxu1 %v536_v12  ;;  %v352_v12 = vld [vmem:[#allocation8 + $0xe8] sm:$0xff]  ;;  %579 = vmatpush3.bf16.msra.mxu0 %v578_v13 }
  0x7b   :  { %v580_v14 = vpack.c.bf16 %v352_v12, %v351_v11 }
  0x7d   :  { %539 = vmatpush1.bf16.msra.mxu1 %v538_v17  ;;  %581 = vmatprep.subr.bf16.mxu0 %v580_v14  ;;  %v89_v17 = vsub.s32 0, %v88_v16 }
  0x7e   :  { %541 = vmatprep.subr.bf16.mxu1 %v540_v18  ;;  %v85_v18 = vld [vmem:[%s845_s2] sm:$0x3] }
  0x7f   :  { %v90_v20 = vrot.slane %v85_v18, %v89_v17  ;;  %v94_v21 = vrot.slane %v85_v18, %v93_v19  ;;  %v243_v38 = vrot.slane %v238_v37, %v89_v17 }
  0x81   :  { %543 = vmatpush1.bf16.msra.mxu1 %v542_v23 }
  0x82   :  { %545 = vmatprep.subr.bf16.mxu1 %v544_v24 }
  0x85   :  { %547 = vmatpush1.bf16.msra.mxu1 %v546_v29  ;;  %v336_v29 = vld [vmem:[#allocation8 + $0x68] sm:$0xff] }
  0x86   :  { %549 = vmatprep.subr.bf16.mxu1 %v548_v30  ;;  %v582_v30 = vpack.c.bf16 %v336_v29, %v335_v28 }
  0x88   :  { %583 = vmatpush3.bf16.msra.mxu0 %v582_v30 }
  0x89   :  { %551 = vmatpush1.bf16.msra.mxu1 %v550_v33  ;;  %v584_v33 = vpack.c.bf16 %v354_v32, %v353_v31 }
  0x8a   :  { %553 = vmatprep.subr.bf16.mxu1 %v552_v36  ;;  %v586_v36 = vpack.c.bf16 %v338_v35, %v337_v34 }
  0x8b   :  { %585 = vmatprep.subr.bf16.mxu0 %v584_v33 }
  0x8c   :  { %587 = vmatpush3.bf16.msra.mxu0 %v586_v36 }
  0x8d   :  { %555 = vmatpush1.bf16.msra.mxu1 %v554_v39  ;;  %v247_v39 = vrot.slane %v238_v37, %v93_v19 }
 0x124   :  { %v167_v22 = vpop.f32.mrb[0].mxu0 }
 0x125   :  { %v168_v23 = vadd.f32 %v167_v22, %v90_v20  ;;  %v169_v24 = vpop.f32.mrb[1].mxu0 }
 0x126   :  { %v170_v25 = vadd.f32 %v169_v24, %v94_v21 }
 0x127   :  { %v172_v27 = vmax.f32 %v168_v23, 0.0 }
 0x128   :  { %v173_v26 = vmax.f32 %v170_v25, 0.0 }
 0x12a   :  { %314 = vmatprep.mubr.f32.mxu1 %v173_v26 }
 0x12b   :  { %315 = vmatmul.mubr.f32.vlgmr.msra.gmra.mrb[0].mxu1 %v172_v27 }
 0x1fe   :  { %v316_v40 = vpop.f32.mrb[0].mxu1 }
 0x1ff   :  { %v317_v41 = vadd.f32 %v316_v40, %v243_v38  ;;  %v318_v42 = vpop.f32.mrb[1].mxu1 }
 0x200   :  { %v319_v43 = vadd.f32 %v318_v42, %v247_v39 }
 0x201   :  { %v321_v45 = vmax.f32 %v317_v41, 0.0 }
 0x202   :  { %v322_v44 = vmax.f32 %v319_v43, 0.0 }
 0x204   :  { %426 = vmatprep.mubr.f32.mxu0 %v322_v44 }
 0x205   :  { %427 = vmatmul.mubr.f32.vlgmr.msra.gmra.mrb[2].mxu0 %v321_v45 }
 0x2d8   :  { %v485_v46 = vpop.f32.mrb[2].mxu0 }
 0x2d9   :  { %v486_v48 = vpop.f32.mrb[3].mxu0 }
 0x2da   :  { %v487_v49 = vadd.f32 %v486_v48, %v485_v46 }
 0x2dc   :  { %v429_v50 = vadd.f32 %v487_v49, %v452_v47 }
 0x2de   :  { %598 = vtanh.f32 %v429_v50 }
 0x2e8   :  { %v599_v51 = vpop.eup %598 }
 0x2e9   :  { %433 = vst [vmem:[#allocation10] sm:$0xff] %v599_v51 }
 0x2ea   :  { %699 = shalt.err (!%p696_p8)
}
 0x2eb   :  { %s700_s6 = scalar_lea.hbm %s850_s7, 128 }
 0x2ec   :  { %p701_p9 = scmp.ne.s32.totalorder %s850_s7, %s700_s6  ;;  %p704_p10 = scmp.lt.u32.totalorder %s700_s6, %s850_s7 }
 0x2ee   :  { %p706_p11 = pnand %p704_p10, %p701_p9 }
 0x2f0   :  { %709 = shalt.err (!%p706_p11)
}
 0x2f1   :  { %443 = dma.vmem_to_hbm [thread:$0]  %s441_s30, 128, %s850_s7, [#allocation4]  }
 0x2f2   :  { %716 = dma.done.wait [#allocation4], 128  }
 0x2f3   :  { %717 = vsyncadd [#allocation4], 4294967168 }
 0x2f4   :  { %447 = vsyncpa [#allocation3], 1 }
 0x2f5   :  { %448 = vsyncpa [#allocation6], 1 }
 0x2f6   :  { %449 = vsyncpa [#allocation9], 1 }
 0x2f7   :  { %450 = vsyncpa [#allocation4], 1 }

</bundles_post_ra>
